<compile_context>
chip_gen: v7x
topology: tpu7x:2x2x1
jax: 0.10.0
libtpu: 0.0.40
codegen_flags: <defaults>
</compile_context>

<pallas_src>
import jax
import jax.numpy as jnp
from jax import lax
from jax.experimental import pallas as pl
from jax.experimental.pallas import tpu as pltpu

NUM_OPS = 8
HIDDEN = 32
NHEAD = 4
HEAD_DIM = HIDDEN // NHEAD
B = 2
T = 8
VOCAB = NUM_OPS + 1        # ops + "start" token
VOCAB_PAD = 16             # pad vocab to a sublane multiple for the one-hot gather
LANES = 4 * HIDDEN         # 128 — lane-dense width for every slab section

# ---- packed-slab row layout (all sections start on 8-row boundaries) --------
R_EMB = 0                          # [VOCAB_PAD, 4H]  emb @ W_ih.T + (b_ih+b_hh)
R_WHH = R_EMB + VOCAB_PAD          # [H, 4H]          W_hh.T
R_INW = R_WHH + HIDDEN             # [H, 128]         in_proj.T (q rows pre-scaled)
R_INB = R_INW + HIDDEN             # [8, 128]         in_proj bias (replicated rows)
R_HSUM = R_INB + 8                 # [H, 128]         per-head lane-sum matrix
R_HEXP = R_HSUM + HIDDEN           # [8, 128]         per-head lane-expand matrix
R_TLW = R_HEXP + 8                 # [H, 128]         (head_w @ out_proj_w).T
R_TLB = R_TLW + HIDDEN             # [8, 128]         fused tail bias (replicated)
SLAB_ROWS = R_TLB + 8              # 168


def controller_kernel(ids_ref, slab_ref, o_ref):
    H = HIDDEN

    # ---- zero-cost views into the packed slab ------------------------------
    emb_gate = slab_ref[R_EMB:R_EMB + VOCAB_PAD, :]          # [16, 4H]
    w_hh_t = slab_ref[R_WHH:R_WHH + H, :]                    # [H, 4H]
    in_w = slab_ref[R_INW:R_INW + H, :]                      # [H, 128] (q|k|v|0)
    in_b = slab_ref[R_INB:R_INB + 8, :][0:B, :]              # [B, 128]
    head_sum = slab_ref[R_HSUM:R_HSUM + H, :]                # [H, 128] (lanes 0..3)
    head_exp = slab_ref[R_HEXP:R_HEXP + 8, :]                # [8, 128] (rows 0..3)
    tail_w = slab_ref[R_TLW:R_TLW + H, :]                    # [H, 128] (lanes 0..7)
    tail_b = slab_ref[R_TLB:R_TLB + 8, :][0:B, :]            # [B, 128]

    # ---- embedding gather fused with input->gate projection + bias ---------
    ids = ids_ref[...]                                       # [T*B, 1] int32 (time-major)
    vocab_iota = lax.broadcasted_iota(jnp.int32, (T * B, VOCAB_PAD), 1)
    onehot = (ids == vocab_iota).astype(jnp.float32)         # [T*B, VOCAB_PAD]
    xg = jnp.dot(onehot, emb_gate,
                 preferred_element_type=jnp.float32)         # [T*B, 4H], bias included

    # ---- LSTM recurrence (serial, 8 static steps) ---------------------------
    h = jnp.zeros((B, H), jnp.float32)
    c = jnp.zeros((B, H), jnp.float32)
    for t in range(T):                                       # static -> unrolled
        gates = xg[t * B:(t + 1) * B, :] + jnp.dot(
            h, w_hh_t, preferred_element_type=jnp.float32)   # [B, 4H]
        sg = jax.nn.sigmoid(gates)                           # whole-vreg EUP passes
        tg = jnp.tanh(gates)
        i = sg[:, 0 * H:1 * H]
        f = sg[:, 1 * H:2 * H]
        g = tg[:, 2 * H:3 * H]
        o = sg[:, 3 * H:4 * H]
        c = f * c + i * g
        h = o * jnp.tanh(c)
    # h == lstm_out[:, -1, :]

    # ---- last-step attention, exact closed form for L = B = 2 ---------------
    # softmax over 2 keys == sigmoid(score difference); per-head sums/expands
    # are matmuls against packed 0/1 constants (no transposes, no head loop).
    qkv = jnp.dot(h, in_w, preferred_element_type=jnp.float32) + in_b   # [B, 128]
    q = qkv[:, 0 * H:1 * H]                                  # scale already folded in
    k = qkv[:, 1 * H:2 * H]
    v = qkv[:, 2 * H:3 * H]
    dk = k[0:1, :] - k[1:2, :]                               # [1, H]
    dv = v[0:1, :] - v[1:2, :]                               # [1, H]
    v1 = v[1:2, :]                                           # [1, H]
    delta = jnp.dot(q * dk, head_sum,
                    preferred_element_type=jnp.float32)      # [B, 128], lanes 0..3 valid
    w8 = jax.nn.sigmoid(delta[:, 0:8])                       # [B, 8]; lanes 4..7 hit zero rows
    wexp = jnp.dot(w8, head_exp,
                   preferred_element_type=jnp.float32)[:, 0:H]   # [B, H]
    ctx = v1 + wexp * dv                                     # [B, H]

    # ---- fused out_proj + output head; lanes >= NUM_OPS stay zero -----------
    o_ref[...] = jnp.dot(ctx, tail_w,
                         preferred_element_type=jnp.float32) + tail_b   # [B, 128]


def _pack_params(params):
    """Host/XLA-side weight prep: fold, transpose, pad and pack into one slab."""
    H = HIDDEN
    scale = 1.0 / jnp.sqrt(jnp.float32(HEAD_DIM))

    # embedding folded into gate projection (+ both LSTM biases)
    emb_pad = jnp.zeros((VOCAB_PAD, H), jnp.float32).at[:VOCAB].set(
        params['embedding'])
    gate_b = (params['b_ih'] + params['b_hh'])[None, :]
    emb_gate = emb_pad @ params['w_ih'].T + gate_b                  # [16, 4H]

    w_hh_t = params['w_hh'].T                                       # [H, 4H]

    # attention in-projection, 1/sqrt(D) folded into the q rows
    in_w = params['in_proj_w'].at[:H].multiply(scale)               # [3H, H]
    in_b = params['in_proj_b'].at[:H].multiply(scale)               # [3H]
    in_w_t = jnp.zeros((H, LANES), jnp.float32).at[:, :3 * H].set(in_w.T)
    in_b_row = jnp.zeros((LANES,), jnp.float32).at[:3 * H].set(in_b)

    # per-head 0/1 reduce/expand constants
    head_sum = (jnp.arange(H)[:, None] // HEAD_DIM
                == jnp.arange(NHEAD)[None, :]).astype(jnp.float32)  # [H, NHEAD]
    head_exp = head_sum.T                                           # [NHEAD, H]

    # fused out_proj + output head
    tail_w = (params['head_w'] @ params['out_proj_w']).T            # [H, NUM_OPS]
    tail_b = (params['out_proj_b'] @ params['head_w'].T
              + params['head_b'])                                   # [NUM_OPS]

    slab = jnp.zeros((SLAB_ROWS, LANES), jnp.float32)
    slab = slab.at[R_EMB:R_EMB + VOCAB_PAD, :4 * H].set(emb_gate)
    slab = slab.at[R_WHH:R_WHH + H, :4 * H].set(w_hh_t)
    slab = slab.at[R_INW:R_INW + H, :].set(in_w_t)
    slab = slab.at[R_INB:R_INB + 8, :].set(jnp.broadcast_to(in_b_row, (8, LANES)))
    slab = slab.at[R_HSUM:R_HSUM + H, :NHEAD].set(head_sum)
    slab = slab.at[R_HEXP:R_HEXP + NHEAD, :H].set(head_exp)
    slab = slab.at[R_TLW:R_TLW + H, :NUM_OPS].set(tail_w)
    slab = slab.at[R_TLB:R_TLB + 8, :NUM_OPS].set(
        jnp.broadcast_to(tail_b, (8, NUM_OPS)))
    return slab


@jax.jit
def controller_forward(prev_actions, params):
    slab = _pack_params(params)                                     # [168, 128] f32
    ids = prev_actions.astype(jnp.int32).T.reshape(T * B, 1)        # time-major
    vmem = pl.BlockSpec(memory_space=pltpu.MemorySpace.VMEM)
    out = pl.pallas_call(
        controller_kernel,
        out_shape=jax.ShapeDtypeStruct((B, LANES), jnp.float32),    # lane-dense tile
        in_specs=[vmem, vmem],
        out_specs=vmem,
        cost_estimate=pl.CostEstimate(flops=262_144,
                                      transcendentals=4_624,
                                      bytes_accessed=87_104),
    )(ids, slab)
    return out[:, :NUM_OPS]


def init_params(key):
    ks = jax.random.split(key, 11)
    s = 1.0 / jnp.sqrt(jnp.float32(HIDDEN))

    def u(k, shape):
        return jax.random.uniform(k, shape, jnp.float32, -s, s)

    return dict(
        embedding=jax.random.normal(ks[0], (VOCAB, HIDDEN), jnp.float32),
        w_ih=u(ks[1], (4 * HIDDEN, HIDDEN)),
        w_hh=u(ks[2], (4 * HIDDEN, HIDDEN)),
        b_ih=u(ks[3], (4 * HIDDEN,)),
        b_hh=u(ks[4], (4 * HIDDEN,)),
        in_proj_w=u(ks[5], (3 * HIDDEN, HIDDEN)),
        in_proj_b=u(ks[6], (3 * HIDDEN,)),
        out_proj_w=u(ks[7], (HIDDEN, HIDDEN)),
        out_proj_b=u(ks[8], (HIDDEN,)),
        head_w=u(ks[9], (NUM_OPS, HIDDEN)),
        head_b=u(ks[10], (NUM_OPS,)),
    )


def ref_forward(prev_actions, p):
    """Pure-JAX golden reference mirroring the PyTorch module exactly."""
    H, D = HIDDEN, HEAD_DIM
    x = p['embedding'][prev_actions]                  # [B, T, H]
    h = jnp.zeros((B, H), jnp.float32)
    c = jnp.zeros((B, H), jnp.float32)
    outs = []
    for t in range(T):
        g = x[:, t] @ p['w_ih'].T + p['b_ih'] + h @ p['w_hh'].T + p['b_hh']
        i = jax.nn.sigmoid(g[:, :H])
        f = jax.nn.sigmoid(g[:, H:2 * H])
        gg = jnp.tanh(g[:, 2 * H:3 * H])
        o = jax.nn.sigmoid(g[:, 3 * H:])
        c = f * c + i * gg
        h = o * jnp.tanh(c)
        outs.append(h)
    lstm_out = jnp.stack(outs, axis=1)                # [B, T, H]
    # MultiheadAttention with default batch_first=False: (L=B, N=T, E=H)
    qkv = lstm_out @ p['in_proj_w'].T + p['in_proj_b']
    q, k, v = jnp.split(qkv, 3, axis=-1)

    def heads(z):                                     # [B,T,H] -> [T, nh, B, d]
        return jnp.transpose(z.reshape(B, T, NHEAD, D), (1, 2, 0, 3))

    qh, kh, vh = heads(q), heads(k), heads(v)
    sc = jnp.einsum('nhld,nhmd->nhlm', qh, kh) / jnp.sqrt(jnp.float32(D))
    at = jax.nn.softmax(sc, axis=-1)
    ctx = jnp.einsum('nhlm,nhmd->nhld', at, vh)       # [T, nh, B, d]
    ctx = jnp.transpose(ctx, (2, 0, 1, 3)).reshape(B, T, H)
    attn_out = ctx @ p['out_proj_w'].T + p['out_proj_b']
    return attn_out[:, -1] @ p['head_w'].T + p['head_b']


if __name__ == "__main__":
    key = jax.random.PRNGKey(0)
    pkey, akey = jax.random.split(key)
    params = init_params(pkey)
    # prev_actions in [0, num_ops] (num_ops is the "start" token, like sample())
    prev_actions = jax.random.randint(akey, (B, T), 0, NUM_OPS + 1,
                                      dtype=jnp.int32)

    logits = controller_forward(prev_actions, params)
    jax.block_until_ready(logits)

    ref = ref_forward(prev_actions, params)
    assert logits.shape == (B, NUM_OPS)
    assert jnp.allclose(logits, ref, rtol=1e-4, atol=1e-4), (logits, ref)
    print("KERNEL_OK")
</pallas_src>

<mosaic_0001>
module attributes {stable_mosaic.version = 11 : i64} {
  func.func @controller_kernel(%arg0: memref<16x1xi32, #tpu.memory_space<vmem>>, %arg1: memref<168x128xf32, #tpu.memory_space<vmem>>, %arg2: memref<2x128xf32, #tpu.memory_space<vmem>>) attributes {dimension_semantics = [], scalar_prefetch = 0 : i64, scratch_operands = 0 : i64, tpu.core_type = #tpu.core_type<tc>} {
    %c0 = arith.constant 0 : index
    %c0_0 = arith.constant 0 : index
    %0 = vector.load %arg1[%c0, %c0_0] : memref<168x128xf32, #tpu.memory_space<vmem>>, vector<16x128xf32>
    %c16 = arith.constant 16 : index
    %c0_1 = arith.constant 0 : index
    %1 = vector.load %arg1[%c16, %c0_1] : memref<168x128xf32, #tpu.memory_space<vmem>>, vector<32x128xf32>
    %c48 = arith.constant 48 : index
    %c0_2 = arith.constant 0 : index
    %2 = vector.load %arg1[%c48, %c0_2] : memref<168x128xf32, #tpu.memory_space<vmem>>, vector<32x128xf32>
    %c80 = arith.constant 80 : index
    %c0_3 = arith.constant 0 : index
    %3 = vector.load %arg1[%c80, %c0_3] : memref<168x128xf32, #tpu.memory_space<vmem>>, vector<8x128xf32>
    %4 = vector.extract_strided_slice %3 {offsets = [0, 0], sizes = [2, 128], strides = [1, 1]} : vector<8x128xf32> to vector<2x128xf32>
    %c88 = arith.constant 88 : index
    %c0_4 = arith.constant 0 : index
    %5 = vector.load %arg1[%c88, %c0_4] : memref<168x128xf32, #tpu.memory_space<vmem>>, vector<32x128xf32>
    %c120 = arith.constant 120 : index
    %c0_5 = arith.constant 0 : index
    %6 = vector.load %arg1[%c120, %c0_5] : memref<168x128xf32, #tpu.memory_space<vmem>>, vector<8x128xf32>
    %c128 = arith.constant 128 : index
    %c0_6 = arith.constant 0 : index
    %7 = vector.load %arg1[%c128, %c0_6] : memref<168x128xf32, #tpu.memory_space<vmem>>, vector<32x128xf32>
    %c160 = arith.constant 160 : index
    %c0_7 = arith.constant 0 : index
    %8 = vector.load %arg1[%c160, %c0_7] : memref<168x128xf32, #tpu.memory_space<vmem>>, vector<8x128xf32>
    %9 = vector.extract_strided_slice %8 {offsets = [0, 0], sizes = [2, 128], strides = [1, 1]} : vector<8x128xf32> to vector<2x128xf32>
    %c0_8 = arith.constant 0 : index
    %c0_9 = arith.constant 0 : index
    %10 = vector.load %arg0[%c0_8, %c0_9] : memref<16x1xi32, #tpu.memory_space<vmem>>, vector<16x1xi32>
    %11 = tpu.iota {dimensions = array<i32: 1>} : vector<16x16xi32>
    %12 = vector.broadcast %10 : vector<16x1xi32> to vector<16x16xi32>
    %13 = arith.cmpi eq, %12, %11 : vector<16x16xi32>
    %14 = arith.extui %13 : vector<16x16xi1> to vector<16x16xi32>
    %15 = arith.sitofp %14 : vector<16x16xi32> to vector<16x16xf32>
    %cst = arith.constant dense<0.000000e+00> : vector<16x128xf32>
    %16 = tpu.matmul %15, %0, %cst {dimension_numbers = #tpu.dot_dimension_numbers<[1], [0], [0], [1], [0, 0, 1, 1], [], []>} : vector<16x16xf32>, vector<16x128xf32>, vector<16x128xf32> -> vector<16x128xf32>
    %cst_10 = arith.constant 0.000000e+00 : f32
    %17 = vector.broadcast %cst_10 : f32 to vector<2x32xf32>
    %cst_11 = arith.constant 0.000000e+00 : f32
    %18 = vector.broadcast %cst_11 : f32 to vector<2x32xf32>
    %19 = vector.extract_strided_slice %16 {offsets = [0, 0], sizes = [2, 128], strides = [1, 1]} : vector<16x128xf32> to vector<2x128xf32>
    %cst_12 = arith.constant dense<0.000000e+00> : vector<2x128xf32>
    %20 = tpu.matmul %17, %1, %cst_12 {dimension_numbers = #tpu.dot_dimension_numbers<[1], [0], [0], [1], [0, 0, 1, 1], [], []>} : vector<2x32xf32>, vector<32x128xf32>, vector<2x128xf32> -> vector<2x128xf32>
    %21 = arith.addf %19, %20 : vector<2x128xf32>
    %22 = arith.negf %21 : vector<2x128xf32>
    %23 = math.exp %22 : vector<2x128xf32>
    %cst_13 = arith.constant 1.000000e+00 : f32
    %24 = vector.broadcast %cst_13 : f32 to vector<2x128xf32>
    %25 = arith.addf %24, %23 : vector<2x128xf32>
    %26 = arith.divf %24, %25 : vector<2x128xf32>
    %27 = math.tanh %21 : vector<2x128xf32>
    %28 = vector.extract_strided_slice %26 {offsets = [0, 0], sizes = [2, 32], strides = [1, 1]} : vector<2x128xf32> to vector<2x32xf32>
    %29 = vector.extract_strided_slice %26 {offsets = [0, 32], sizes = [2, 32], strides = [1, 1]} : vector<2x128xf32> to vector<2x32xf32>
    %30 = vector.extract_strided_slice %27 {offsets = [0, 64], sizes = [2, 32], strides = [1, 1]} : vector<2x128xf32> to vector<2x32xf32>
    %31 = vector.extract_strided_slice %26 {offsets = [0, 96], sizes = [2, 32], strides = [1, 1]} : vector<2x128xf32> to vector<2x32xf32>
    %32 = arith.mulf %29, %18 : vector<2x32xf32>
    %33 = arith.mulf %28, %30 : vector<2x32xf32>
    %34 = arith.addf %32, %33 : vector<2x32xf32>
    %35 = math.tanh %34 : vector<2x32xf32>
    %36 = arith.mulf %31, %35 : vector<2x32xf32>
    %37 = vector.extract_strided_slice %16 {offsets = [2, 0], sizes = [2, 128], strides = [1, 1]} : vector<16x128xf32> to vector<2x128xf32>
    %cst_14 = arith.constant dense<0.000000e+00> : vector<2x128xf32>
    %38 = tpu.matmul %36, %1, %cst_14 {dimension_numbers = #tpu.dot_dimension_numbers<[1], [0], [0], [1], [0, 0, 1, 1], [], []>} : vector<2x32xf32>, vector<32x128xf32>, vector<2x128xf32> -> vector<2x128xf32>
    %39 = arith.addf %37, %38 : vector<2x128xf32>
    %40 = arith.negf %39 : vector<2x128xf32>
    %41 = math.exp %40 : vector<2x128xf32>
    %cst_15 = arith.constant 1.000000e+00 : f32
    %42 = vector.broadcast %cst_15 : f32 to vector<2x128xf32>
    %43 = arith.addf %42, %41 : vector<2x128xf32>
    %44 = arith.divf %42, %43 : vector<2x128xf32>
    %45 = math.tanh %39 : vector<2x128xf32>
    %46 = vector.extract_strided_slice %44 {offsets = [0, 0], sizes = [2, 32], strides = [1, 1]} : vector<2x128xf32> to vector<2x32xf32>
    %47 = vector.extract_strided_slice %44 {offsets = [0, 32], sizes = [2, 32], strides = [1, 1]} : vector<2x128xf32> to vector<2x32xf32>
    %48 = vector.extract_strided_slice %45 {offsets = [0, 64], sizes = [2, 32], strides = [1, 1]} : vector<2x128xf32> to vector<2x32xf32>
    %49 = vector.extract_strided_slice %44 {offsets = [0, 96], sizes = [2, 32], strides = [1, 1]} : vector<2x128xf32> to vector<2x32xf32>
    %50 = arith.mulf %47, %34 : vector<2x32xf32>
    %51 = arith.mulf %46, %48 : vector<2x32xf32>
    %52 = arith.addf %50, %51 : vector<2x32xf32>
    %53 = math.tanh %52 : vector<2x32xf32>
    %54 = arith.mulf %49, %53 : vector<2x32xf32>
    %55 = vector.extract_strided_slice %16 {offsets = [4, 0], sizes = [2, 128], strides = [1, 1]} : vector<16x128xf32> to vector<2x128xf32>
    %cst_16 = arith.constant dense<0.000000e+00> : vector<2x128xf32>
    %56 = tpu.matmul %54, %1, %cst_16 {dimension_numbers = #tpu.dot_dimension_numbers<[1], [0], [0], [1], [0, 0, 1, 1], [], []>} : vector<2x32xf32>, vector<32x128xf32>, vector<2x128xf32> -> vector<2x128xf32>
    %57 = arith.addf %55, %56 : vector<2x128xf32>
    %58 = arith.negf %57 : vector<2x128xf32>
    %59 = math.exp %58 : vector<2x128xf32>
    %cst_17 = arith.constant 1.000000e+00 : f32
    %60 = vector.broadcast %cst_17 : f32 to vector<2x128xf32>
    %61 = arith.addf %60, %59 : vector<2x128xf32>
    %62 = arith.divf %60, %61 : vector<2x128xf32>
    %63 = math.tanh %57 : vector<2x128xf32>
    %64 = vector.extract_strided_slice %62 {offsets = [0, 0], sizes = [2, 32], strides = [1, 1]} : vector<2x128xf32> to vector<2x32xf32>
    %65 = vector.extract_strided_slice %62 {offsets = [0, 32], sizes = [2, 32], strides = [1, 1]} : vector<2x128xf32> to vector<2x32xf32>
    %66 = vector.extract_strided_slice %63 {offsets = [0, 64], sizes = [2, 32], strides = [1, 1]} : vector<2x128xf32> to vector<2x32xf32>
    %67 = vector.extract_strided_slice %62 {offsets = [0, 96], sizes = [2, 32], strides = [1, 1]} : vector<2x128xf32> to vector<2x32xf32>
    %68 = arith.mulf %65, %52 : vector<2x32xf32>
    %69 = arith.mulf %64, %66 : vector<2x32xf32>
    %70 = arith.addf %68, %69 : vector<2x32xf32>
    %71 = math.tanh %70 : vector<2x32xf32>
    %72 = arith.mulf %67, %71 : vector<2x32xf32>
    %73 = vector.extract_strided_slice %16 {offsets = [6, 0], sizes = [2, 128], strides = [1, 1]} : vector<16x128xf32> to vector<2x128xf32>
    %cst_18 = arith.constant dense<0.000000e+00> : vector<2x128xf32>
    %74 = tpu.matmul %72, %1, %cst_18 {dimension_numbers = #tpu.dot_dimension_numbers<[1], [0], [0], [1], [0, 0, 1, 1], [], []>} : vector<2x32xf32>, vector<32x128xf32>, vector<2x128xf32> -> vector<2x128xf32>
    %75 = arith.addf %73, %74 : vector<2x128xf32>
    %76 = arith.negf %75 : vector<2x128xf32>
    %77 = math.exp %76 : vector<2x128xf32>
    %cst_19 = arith.constant 1.000000e+00 : f32
    %78 = vector.broadcast %cst_19 : f32 to vector<2x128xf32>
    %79 = arith.addf %78, %77 : vector<2x128xf32>
    %80 = arith.divf %78, %79 : vector<2x128xf32>
    %81 = math.tanh %75 : vector<2x128xf32>
    %82 = vector.extract_strided_slice %80 {offsets = [0, 0], sizes = [2, 32], strides = [1, 1]} : vector<2x128xf32> to vector<2x32xf32>
    %83 = vector.extract_strided_slice %80 {offsets = [0, 32], sizes = [2, 32], strides = [1, 1]} : vector<2x128xf32> to vector<2x32xf32>
    %84 = vector.extract_strided_slice %81 {offsets = [0, 64], sizes = [2, 32], strides = [1, 1]} : vector<2x128xf32> to vector<2x32xf32>
    %85 = vector.extract_strided_slice %80 {offsets = [0, 96], sizes = [2, 32], strides = [1, 1]} : vector<2x128xf32> to vector<2x32xf32>
    %86 = arith.mulf %83, %70 : vector<2x32xf32>
    %87 = arith.mulf %82, %84 : vector<2x32xf32>
    %88 = arith.addf %86, %87 : vector<2x32xf32>
    %89 = math.tanh %88 : vector<2x32xf32>
    %90 = arith.mulf %85, %89 : vector<2x32xf32>
    %91 = vector.extract_strided_slice %16 {offsets = [8, 0], sizes = [2, 128], strides = [1, 1]} : vector<16x128xf32> to vector<2x128xf32>
    %cst_20 = arith.constant dense<0.000000e+00> : vector<2x128xf32>
    %92 = tpu.matmul %90, %1, %cst_20 {dimension_numbers = #tpu.dot_dimension_numbers<[1], [0], [0], [1], [0, 0, 1, 1], [], []>} : vector<2x32xf32>, vector<32x128xf32>, vector<2x128xf32> -> vector<2x128xf32>
    %93 = arith.addf %91, %92 : vector<2x128xf32>
    %94 = arith.negf %93 : vector<2x128xf32>
    %95 = math.exp %94 : vector<2x128xf32>
    %cst_21 = arith.constant 1.000000e+00 : f32
    %96 = vector.broadcast %cst_21 : f32 to vector<2x128xf32>
    %97 = arith.addf %96, %95 : vector<2x128xf32>
    %98 = arith.divf %96, %97 : vector<2x128xf32>
    %99 = math.tanh %93 : vector<2x128xf32>
    %100 = vector.extract_strided_slice %98 {offsets = [0, 0], sizes = [2, 32], strides = [1, 1]} : vector<2x128xf32> to vector<2x32xf32>
    %101 = vector.extract_strided_slice %98 {offsets = [0, 32], sizes = [2, 32], strides = [1, 1]} : vector<2x128xf32> to vector<2x32xf32>
    %102 = vector.extract_strided_slice %99 {offsets = [0, 64], sizes = [2, 32], strides = [1, 1]} : vector<2x128xf32> to vector<2x32xf32>
    %103 = vector.extract_strided_slice %98 {offsets = [0, 96], sizes = [2, 32], strides = [1, 1]} : vector<2x128xf32> to vector<2x32xf32>
    %104 = arith.mulf %101, %88 : vector<2x32xf32>
    %105 = arith.mulf %100, %102 : vector<2x32xf32>
    %106 = arith.addf %104, %105 : vector<2x32xf32>
    %107 = math.tanh %106 : vector<2x32xf32>
    %108 = arith.mulf %103, %107 : vector<2x32xf32>
    %109 = vector.extract_strided_slice %16 {offsets = [10, 0], sizes = [2, 128], strides = [1, 1]} : vector<16x128xf32> to vector<2x128xf32>
    %cst_22 = arith.constant dense<0.000000e+00> : vector<2x128xf32>
    %110 = tpu.matmul %108, %1, %cst_22 {dimension_numbers = #tpu.dot_dimension_numbers<[1], [0], [0], [1], [0, 0, 1, 1], [], []>} : vector<2x32xf32>, vector<32x128xf32>, vector<2x128xf32> -> vector<2x128xf32>
    %111 = arith.addf %109, %110 : vector<2x128xf32>
    %112 = arith.negf %111 : vector<2x128xf32>
    %113 = math.exp %112 : vector<2x128xf32>
    %cst_23 = arith.constant 1.000000e+00 : f32
    %114 = vector.broadcast %cst_23 : f32 to vector<2x128xf32>
    %115 = arith.addf %114, %113 : vector<2x128xf32>
    %116 = arith.divf %114, %115 : vector<2x128xf32>
    %117 = math.tanh %111 : vector<2x128xf32>
    %118 = vector.extract_strided_slice %116 {offsets = [0, 0], sizes = [2, 32], strides = [1, 1]} : vector<2x128xf32> to vector<2x32xf32>
    %119 = vector.extract_strided_slice %116 {offsets = [0, 32], sizes = [2, 32], strides = [1, 1]} : vector<2x128xf32> to vector<2x32xf32>
    %120 = vector.extract_strided_slice %117 {offsets = [0, 64], sizes = [2, 32], strides = [1, 1]} : vector<2x128xf32> to vector<2x32xf32>
    %121 = vector.extract_strided_slice %116 {offsets = [0, 96], sizes = [2, 32], strides = [1, 1]} : vector<2x128xf32> to vector<2x32xf32>
    %122 = arith.mulf %119, %106 : vector<2x32xf32>
    %123 = arith.mulf %118, %120 : vector<2x32xf32>
    %124 = arith.addf %122, %123 : vector<2x32xf32>
    %125 = math.tanh %124 : vector<2x32xf32>
    %126 = arith.mulf %121, %125 : vector<2x32xf32>
    %127 = vector.extract_strided_slice %16 {offsets = [12, 0], sizes = [2, 128], strides = [1, 1]} : vector<16x128xf32> to vector<2x128xf32>
    %cst_24 = arith.constant dense<0.000000e+00> : vector<2x128xf32>
    %128 = tpu.matmul %126, %1, %cst_24 {dimension_numbers = #tpu.dot_dimension_numbers<[1], [0], [0], [1], [0, 0, 1, 1], [], []>} : vector<2x32xf32>, vector<32x128xf32>, vector<2x128xf32> -> vector<2x128xf32>
    %129 = arith.addf %127, %128 : vector<2x128xf32>
    %130 = arith.negf %129 : vector<2x128xf32>
    %131 = math.exp %130 : vector<2x128xf32>
    %cst_25 = arith.constant 1.000000e+00 : f32
    %132 = vector.broadcast %cst_25 : f32 to vector<2x128xf32>
    %133 = arith.addf %132, %131 : vector<2x128xf32>
    %134 = arith.divf %132, %133 : vector<2x128xf32>
    %135 = math.tanh %129 : vector<2x128xf32>
    %136 = vector.extract_strided_slice %134 {offsets = [0, 0], sizes = [2, 32], strides = [1, 1]} : vector<2x128xf32> to vector<2x32xf32>
    %137 = vector.extract_strided_slice %134 {offsets = [0, 32], sizes = [2, 32], strides = [1, 1]} : vector<2x128xf32> to vector<2x32xf32>
    %138 = vector.extract_strided_slice %135 {offsets = [0, 64], sizes = [2, 32], strides = [1, 1]} : vector<2x128xf32> to vector<2x32xf32>
    %139 = vector.extract_strided_slice %134 {offsets = [0, 96], sizes = [2, 32], strides = [1, 1]} : vector<2x128xf32> to vector<2x32xf32>
    %140 = arith.mulf %137, %124 : vector<2x32xf32>
    %141 = arith.mulf %136, %138 : vector<2x32xf32>
    %142 = arith.addf %140, %141 : vector<2x32xf32>
    %143 = math.tanh %142 : vector<2x32xf32>
    %144 = arith.mulf %139, %143 : vector<2x32xf32>
    %145 = vector.extract_strided_slice %16 {offsets = [14, 0], sizes = [2, 128], strides = [1, 1]} : vector<16x128xf32> to vector<2x128xf32>
    %cst_26 = arith.constant dense<0.000000e+00> : vector<2x128xf32>
    %146 = tpu.matmul %144, %1, %cst_26 {dimension_numbers = #tpu.dot_dimension_numbers<[1], [0], [0], [1], [0, 0, 1, 1], [], []>} : vector<2x32xf32>, vector<32x128xf32>, vector<2x128xf32> -> vector<2x128xf32>
    %147 = arith.addf %145, %146 : vector<2x128xf32>
    %148 = arith.negf %147 : vector<2x128xf32>
    %149 = math.exp %148 : vector<2x128xf32>
    %cst_27 = arith.constant 1.000000e+00 : f32
    %150 = vector.broadcast %cst_27 : f32 to vector<2x128xf32>
    %151 = arith.addf %150, %149 : vector<2x128xf32>
    %152 = arith.divf %150, %151 : vector<2x128xf32>
    %153 = math.tanh %147 : vector<2x128xf32>
    %154 = vector.extract_strided_slice %152 {offsets = [0, 0], sizes = [2, 32], strides = [1, 1]} : vector<2x128xf32> to vector<2x32xf32>
    %155 = vector.extract_strided_slice %152 {offsets = [0, 32], sizes = [2, 32], strides = [1, 1]} : vector<2x128xf32> to vector<2x32xf32>
    %156 = vector.extract_strided_slice %153 {offsets = [0, 64], sizes = [2, 32], strides = [1, 1]} : vector<2x128xf32> to vector<2x32xf32>
    %157 = vector.extract_strided_slice %152 {offsets = [0, 96], sizes = [2, 32], strides = [1, 1]} : vector<2x128xf32> to vector<2x32xf32>
    %158 = arith.mulf %155, %142 : vector<2x32xf32>
    %159 = arith.mulf %154, %156 : vector<2x32xf32>
    %160 = arith.addf %158, %159 : vector<2x32xf32>
    %161 = math.tanh %160 : vector<2x32xf32>
    %162 = arith.mulf %157, %161 : vector<2x32xf32>
    %cst_28 = arith.constant dense<0.000000e+00> : vector<2x128xf32>
    %163 = tpu.matmul %162, %2, %cst_28 {dimension_numbers = #tpu.dot_dimension_numbers<[1], [0], [0], [1], [0, 0, 1, 1], [], []>} : vector<2x32xf32>, vector<32x128xf32>, vector<2x128xf32> -> vector<2x128xf32>
    %164 = arith.addf %163, %4 : vector<2x128xf32>
    %165 = vector.extract_strided_slice %164 {offsets = [0, 0], sizes = [2, 32], strides = [1, 1]} : vector<2x128xf32> to vector<2x32xf32>
    %166 = vector.extract_strided_slice %164 {offsets = [0, 32], sizes = [2, 32], strides = [1, 1]} : vector<2x128xf32> to vector<2x32xf32>
    %167 = vector.extract_strided_slice %164 {offsets = [0, 64], sizes = [2, 32], strides = [1, 1]} : vector<2x128xf32> to vector<2x32xf32>
    %168 = vector.extract_strided_slice %166 {offsets = [0, 0], sizes = [1, 32], strides = [1, 1]} : vector<2x32xf32> to vector<1x32xf32>
    %169 = vector.extract_strided_slice %166 {offsets = [1, 0], sizes = [1, 32], strides = [1, 1]} : vector<2x32xf32> to vector<1x32xf32>
    %170 = arith.subf %168, %169 : vector<1x32xf32>
    %171 = vector.extract_strided_slice %167 {offsets = [0, 0], sizes = [1, 32], strides = [1, 1]} : vector<2x32xf32> to vector<1x32xf32>
    %172 = vector.extract_strided_slice %167 {offsets = [1, 0], sizes = [1, 32], strides = [1, 1]} : vector<2x32xf32> to vector<1x32xf32>
    %173 = arith.subf %171, %172 : vector<1x32xf32>
    %174 = vector.extract_strided_slice %167 {offsets = [1, 0], sizes = [1, 32], strides = [1, 1]} : vector<2x32xf32> to vector<1x32xf32>
    %175 = vector.broadcast %170 : vector<1x32xf32> to vector<2x32xf32>
    %176 = arith.mulf %165, %175 : vector<2x32xf32>
    %cst_29 = arith.constant dense<0.000000e+00> : vector<2x128xf32>
    %177 = tpu.matmul %176, %5, %cst_29 {dimension_numbers = #tpu.dot_dimension_numbers<[1], [0], [0], [1], [0, 0, 1, 1], [], []>} : vector<2x32xf32>, vector<32x128xf32>, vector<2x128xf32> -> vector<2x128xf32>
    %178 = vector.extract_strided_slice %177 {offsets = [0, 0], sizes = [2, 8], strides = [1, 1]} : vector<2x128xf32> to vector<2x8xf32>
    %179 = arith.negf %178 : vector<2x8xf32>
    %180 = math.exp %179 : vector<2x8xf32>
    %cst_30 = arith.constant 1.000000e+00 : f32
    %181 = vector.broadcast %cst_30 : f32 to vector<2x8xf32>
    %182 = arith.addf %181, %180 : vector<2x8xf32>
    %183 = arith.divf %181, %182 : vector<2x8xf32>
    %cst_31 = arith.constant dense<0.000000e+00> : vector<2x128xf32>
    %184 = tpu.matmul %183, %6, %cst_31 {dimension_numbers = #tpu.dot_dimension_numbers<[1], [0], [0], [1], [0, 0, 1, 1], [], []>} : vector<2x8xf32>, vector<8x128xf32>, vector<2x128xf32> -> vector<2x128xf32>
    %185 = vector.extract_strided_slice %184 {offsets = [0, 0], sizes = [2, 32], strides = [1, 1]} : vector<2x128xf32> to vector<2x32xf32>
    %186 = vector.broadcast %173 : vector<1x32xf32> to vector<2x32xf32>
    %187 = arith.mulf %185, %186 : vector<2x32xf32>
    %188 = vector.broadcast %174 : vector<1x32xf32> to vector<2x32xf32>
    %189 = arith.addf %188, %187 : vector<2x32xf32>
    %cst_32 = arith.constant dense<0.000000e+00> : vector<2x128xf32>
    %190 = tpu.matmul %189, %7, %cst_32 {dimension_numbers = #tpu.dot_dimension_numbers<[1], [0], [0], [1], [0, 0, 1, 1], [], []>} : vector<2x32xf32>, vector<32x128xf32>, vector<2x128xf32> -> vector<2x128xf32>
    %191 = arith.addf %190, %9 : vector<2x128xf32>
    %c0_33 = arith.constant 0 : index
    %c0_34 = arith.constant 0 : index
    %192 = vector.load %arg2[%c0_33, %c0_34] : memref<2x128xf32, #tpu.memory_space<vmem>>, vector<2x128xf32>
    tpu.vector_store %arg2[%c0_33, %c0_34], %191 {strides = array<i32>} : memref<2x128xf32, #tpu.memory_space<vmem>>, vector<2x128xf32>,
    return
  }
}

</mosaic_0001>

<bundles_post_ra>
// kernel: controller_forward.1
= control target key start
LH: loop header
LB: loop body
LE: loop exit
PB: predicated region body
PF: predicated region fallthrough
CT: control target
= control target key end

     0   :  { %v1708_v2 = vmov 0   ;;  %s1941_s0 = inlined_call_operand.vmem [shape: s32[16,1], index: 0, kind: input, shape index: {}]   ;;  %s1942_s1 = inlined_call_operand.vmem [shape: f32[168,128], index: 1, kind: input, shape index: {}]   ;;  %s1943_s2 = inlined_call_operand.hbm [shape: f32[2,128], index: 2, kind: output, shape index: {}]  }
   0x1   :  { %v33_v0 = vld [vmem:[%s1941_s0] sm:$0xff]  ;;  %1615 = vset.pattern.permute.xlu0 %v1708_v2  ;;  %v13_v3 = vld [vmem:[%s1942_s1 + $0x8] sm:$0xff] }
   0x2   :  { %v12_v1 = vld [vmem:[%s1942_s1] sm:$0xff] }
   0x3   :  { %7 = vsyncpa [#allocation3], 0  ;;  %38 = vperm.xlu0 %1615, %v33_v0   ;;  %v1537_v4 = vpack.c.bf16 %v13_v3, %v12_v1  ;;  %v34_v5 = vld [vmem:[%s1941_s0 + $0x8] sm:$0xff]  ;;  %v14_v6 = vld [vmem:[%s1942_s1 + $0x10] sm:$0xff]  ;;  %v1709_v9 = vmov 0.0|0.0   ;;  %vm1710_vm0 = vmmov 0   ;;  %v35_v14 = vlaneseq }
   0x4   :  { %v15_v7 = vld [vmem:[%s1942_s1 + $0x18] sm:$0xff]  ;;  %1547 = vmatprep.subr.bf16.mxu0 %v1709_v9  ;;  %v16_v10 = vld [vmem:[%s1942_s1 + $0x20] sm:$0xff]  ;;  %v17_v11 = vld [vmem:[%s1942_s1 + $0x28] sm:$0xff]  ;;  %v1711_v13 = vmov 0.0   ;;  %vm49_vm1 = vcmask 130048   ;;  %s1712_s24 = smov 64  }
   0x5   :  { %1538 = vmatprep.subr.bf16.mxu1 %v1537_v4  ;;  %v1749_v8 = vpack.c.bf16 %v15_v7, %v14_v6  ;;  %v1761_v12 = vpack.c.bf16 %v17_v11, %v16_v10  ;;  %1430 = vmatprep.mubr.msk.f32.mxu0 %vm1710_vm0, %v1711_v13  ;;  %v36_v15 = vand.u32 127, %v35_v14  ;;  %s1713_s25 = smov 32   ;;  %vm131_vm4 = vcmask 261120   ;;  %s1714_s16 = smov 96  }
   0x6   :  { %1540 = vmatpush3.bf16.msra.mxu1 %v1537_v4  ;;  %vm1142_vm5 = vcmask 64512   ;;  %s1715_s29 = smov [#allocation2]  }
   0x7   :  { %41 = vperm.xlu0 %1615, %v34_v5   ;;  %1541 = vmatprep.subr.bf16.mxu1 %v1709_v9  ;;  %s1311_s30 = sshll.u32 %s1715_s29, 4  ;;  %s1312_s30 = int_to_ptr.vmem [resolvable:$true] %s1311_s30 }
   0x8   :  { %1549 = vmatpush3.bf16.msra.mxu0 %v1749_v8  ;;  %s1684_s3 = scalar_lea.vmem %s1312_s30, 32  ;;  %p1689_p1 = scmp.lt.s32.totalorder %s1312_s30, %s1312_s30 }
   0x9   :  { %1550 = vmatprep.subr.bf16.mxu0 %v1709_v9  ;;  %p1685_p0 = scmp.ne.s32.totalorder %s1312_s30, %s1684_s3  ;;  %p1690_p2 = scmp.lt.s32.totalorder %s1684_s3, %s1684_s3 }
   0xb   :  { %p1691_p3 = por %p1690_p2, %p1689_p1 }
   0xc   :  { %1552 = vmatpush3.bf16.msra.mxu0 %v1761_v12 }
   0xd   :  { %1559 = vmatprep.subr.bf16.mxu0 %v1709_v9  ;;  %p1692_p4 = pnand %p1691_p3, %p1685_p0 }
  0x82   :  { %v39_v16 = vpop.permute.xlu0 %38 }
  0x83   :  { %vm43_vm2 = vcmp.eq.s32.totalorder %v39_v16, %v36_v15 }
  0x84   :  { %v1319_v17 = vsel %vm43_vm2, 1.0, %v1711_v13 }
  0x85   :  { %1408 = vmatprep.mubr.msk.f32.mxu1 %vm49_vm1, %v1319_v17 }
  0x86   :  { %v42_v18 = vpop.permute.xlu0 %41 }
  0x87   :  { %vm44_vm3 = vcmp.eq.s32.totalorder %v42_v18, %v36_v15 }
  0x88   :  { %v1320_v19 = vsel %vm44_vm3, 1.0, %v1711_v13 }
  0x89   :  { %1409 = vmatmul.mubr.msk.f32.vlgmr.msra.gmra.mrb[0].mxu1 %vm49_vm1, %v1320_v19 }
  0x8a   :  { %1543 = vmatpush3.bf16.msra.mxu1 %v1749_v8  ;;  %1419 = vmatprep.mubr.msk.f32.mxu1 %vm1710_vm0, %v1711_v13 }
  0x8b   :  { %1544 = vmatprep.subr.bf16.mxu1 %v1709_v9 }
  0x8e   :  { %1546 = vmatpush3.bf16.msra.mxu1 %v1761_v12 }
  0x8f   :  { %1553 = vmatprep.subr.bf16.mxu1 %v1709_v9 }
  0x91   :  { %1420 = vmatmul.mubr.f32.vlgmr.msra.gmra.mrb[2].mxu1 %v1711_v13 }
  0x92   :  { %1555 = vmatpush3.bf16.msra.mxu1 %v1749_v8  ;;  %1441 = vmatprep.mubr.msk.f32.mxu1 %vm1710_vm0, %v1711_v13 }
  0x93   :  { %1556 = vmatprep.subr.bf16.mxu1 %v1709_v9 }
  0x96   :  { %1558 = vmatpush3.bf16.msra.mxu1 %v1761_v12 }
  0x97   :  { %1565 = vmatprep.subr.bf16.mxu1 %v1709_v9 }
 0x15c   :  { %v1783_v20 = vpop.f32.mrb[0].mxu1 }
 0x15d   :  { %v1785_v21 = vpop.f32.mrb[1].mxu1 }
 0x164   :  { %v201_v22 = vpop.f32.mrb[2].mxu1 }
 0x165   :  { %v205_v23 = vadd.f32 %v201_v22, %v1785_v21  ;;  %v1421_v24 = vpop.f32.mrb[3].mxu1 }
 0x167   :  { %1616 = vtanh.f32 %v205_v23  ;;  %v1323_v26 = vmul.f32 -1.442695, %v205_v23 }
 0x169   :  { %1618 = vpow2.f32 %v1323_v26 }
 0x171   :  { %v1617_v25 = vpop.eup %1616 }
 0x172   :  { %215 = vrot.lane.b32.xlu1 %v1617_v25, %s1712_s24 }
 0x173   :  { %v1619_v27 = vpop.eup %1618 }
 0x174   :  { %v209_v28 = vadd.f32 1.0, %v1619_v27 }
 0x176   :  { %1620 = vrcp.f32 %v209_v28 }
 0x180   :  { %v1621_v29 = vpop.eup %1620 }
 0x181   :  { %v213_v32 = vmul.f32 0.0, %v1621_v29 }
 0x1e4   :  { %v216_v30 = vpop.permute.xlu1 %215 }
 0x1e5   :  { %v218_v31 = vmul.f32 %v1621_v29, %v216_v30 }
 0x1e7   :  { %220 = vrot.lane.b32.xlu1 %v218_v31, %s1713_s25 }
 0x259   :  { %v221_v33 = vpop.permute.xlu1 %220 }
 0x25a   :  { %v223_v34 = vadd.f32 %v221_v33, %v213_v32 }
 0x25c   :  { %1622 = vtanh.f32 %v223_v34  ;;  %v317_v50 = vrot.slane %v223_v34, 6 }
 0x266   :  { %v1623_v35 = vpop.eup %1622 }
 0x267   :  { %226 = vrot.lane.b32.xlu0 %v1623_v35, %s1712_s24 }
 0x2d9   :  { %v227_v36 = vpop.permute.xlu0 %226 }
 0x2da   :  { %v229_v37 = vmul.f32 %v1621_v29, %v227_v36 }
 0x2dc   :  { %231 = vrot.lane.b32.xlu1 %v229_v37, %s1713_s25 }
 0x34e   :  { %v232_v38 = vpop.permute.xlu1 %231 }
 0x34f   :  { %1431 = vmatmul.mubr.msk.f32.vlgmr.msra.gmra.mrb[0].mxu0 %vm131_vm4, %v232_v38 }
 0x350   :  { %1561 = vmatpush3.bf16.msra.mxu0 %v1749_v8  ;;  %1452 = vmatprep.mubr.msk.f32.mxu0 %vm1710_vm0, %v1711_v13 }
 0x351   :  { %1562 = vmatprep.subr.bf16.mxu0 %v1709_v9 }
 0x354   :  { %1564 = vmatpush3.bf16.msra.mxu0 %v1761_v12 }
 0x355   :  { %1571 = vmatprep.subr.bf16.mxu0 %v1709_v9 }
 0x422   :  { %v301_v39 = vpop.f32.mrb[0].mxu0 }
 0x423   :  { %v306_v40 = vrot.slane %v301_v39, 6  ;;  %v1432_v41 = vpop.f32.mrb[1].mxu0 }
 0x425   :  { %v308_v42 = vadd.f32 %v306_v40, %v1785_v21 }
 0x427   :  { %1624 = vtanh.f32 %v308_v42  ;;  %v1325_v44 = vmul.f32 -1.442695, %v308_v42 }
 0x429   :  { %1626 = vpow2.f32 %v1325_v44 }
 0x431   :  { %v1625_v43 = vpop.eup %1624 }
 0x432   :  { %321 = vrot.lane.b32.xlu0 %v1625_v43, %s1712_s24 }
 0x433   :  { %v1627_v45 = vpop.eup %1626 }
 0x434   :  { %v312_v46 = vadd.f32 1.0, %v1627_v45 }
 0x436   :  { %1628 = vrcp.f32 %v312_v46 }
 0x440   :  { %v1629_v47 = vpop.eup %1628 }
 0x441   :  { %v319_v51 = vmul.f32 %v1629_v47, %v317_v50 }
 0x4a4   :  { %v322_v48 = vpop.permute.xlu0 %321 }
 0x4a5   :  { %v324_v49 = vmul.f32 %v1629_v47, %v322_v48 }
 0x4a7   :  { %326 = vrot.lane.b32.xlu1 %v324_v49, %s1713_s25 }
 0x519   :  { %v327_v52 = vpop.permute.xlu1 %326 }
 0x51a   :  { %v329_v53 = vadd.f32 %v327_v52, %v319_v51 }
 0x51c   :  { %1630 = vtanh.f32 %v329_v53  ;;  %v424_v6 = vrot.slane %v329_v53, 6 }
 0x526   :  { %v1631_v54 = vpop.eup %1630 }
 0x527   :  { %332 = vrot.lane.b32.xlu0 %v1631_v54, %s1712_s24 }
 0x599   :  { %v333_v55 = vpop.permute.xlu0 %332 }
 0x59a   :  { %v335_v56 = vmul.f32 %v1629_v47, %v333_v55 }
 0x59c   :  { %v337_v57 = vrot.slane %v335_v56, 2 }
 0x59e   :  { %338 = vrot.lane.b32.xlu1 %v337_v57, %s1713_s25 }
 0x610   :  { %v339_v58 = vpop.permute.xlu1 %338 }
 0x611   :  { %1442 = vmatmul.mubr.msk.f32.vlgmr.msra.gmra.mrb[4].mxu1 %vm131_vm4, %v339_v58 }
 0x612   :  { %1567 = vmatpush3.bf16.msra.mxu1 %v1749_v8  ;;  %1463 = vmatprep.mubr.msk.f32.mxu1 %vm1710_vm0, %v1711_v13 }
 0x613   :  { %1568 = vmatprep.subr.bf16.mxu1 %v1709_v9 }
 0x616   :  { %1570 = vmatpush3.bf16.msra.mxu1 %v1761_v12 }
 0x617   :  { %1577 = vmatprep.subr.bf16.mxu1 %v1709_v9 }
 0x6e4   :  { %v408_v59 = vpop.f32.mrb[4].mxu1 }
 0x6e5   :  { %v413_v60 = vrot.slane %v408_v59, 4  ;;  %v1443_v61 = vpop.f32.mrb[5].mxu1 }
 0x6e7   :  { %v415_v62 = vadd.f32 %v413_v60, %v1785_v21 }
 0x6e9   :  { %1632 = vtanh.f32 %v415_v62  ;;  %v1327_v0 = vmul.f32 -1.442695, %v415_v62 }
 0x6eb   :  { %1634 = vpow2.f32 %v1327_v0 }
 0x6f3   :  { %v1633_v63 = vpop.eup %1632 }
 0x6f4   :  { %428 = vrot.lane.b32.xlu0 %v1633_v63, %s1712_s24 }
 0x6f5   :  { %v1635_v1 = vpop.eup %1634 }
 0x6f6   :  { %v419_v2 = vadd.f32 1.0, %v1635_v1 }
 0x6f8   :  { %1636 = vrcp.f32 %v419_v2 }
 0x702   :  { %v1637_v3 = vpop.eup %1636 }
 0x703   :  { %v426_v7 = vmul.f32 %v1637_v3, %v424_v6 }
 0x766   :  { %v429_v4 = vpop.permute.xlu0 %428 }
 0x767   :  { %v431_v5 = vmul.f32 %v1637_v3, %v429_v4 }
 0x769   :  { %433 = vrot.lane.b32.xlu1 %v431_v5, %s1713_s25 }
 0x7db   :  { %v434_v10 = vpop.permute.xlu1 %433 }
 0x7dc   :  { %v436_v11 = vadd.f32 %v434_v10, %v426_v7 }
 0x7de   :  { %1638 = vtanh.f32 %v436_v11  ;;  %v531_v33 = vrot.slane %v436_v11, 6 }
 0x7e8   :  { %v1639_v15 = vpop.eup %1638 }
 0x7e9   :  { %439 = vrot.lane.b32.xlu0 %v1639_v15, %s1712_s24 }
 0x85b   :  { %v440_v16 = vpop.permute.xlu0 %439 }
 0x85c   :  { %v442_v17 = vmul.f32 %v1637_v3, %v440_v16 }
 0x85e   :  { %v444_v18 = vrot.slane %v442_v17, 4 }
 0x860   :  { %445 = vrot.lane.b32.xlu1 %v444_v18, %s1713_s25 }
 0x8d2   :  { %v446_v19 = vpop.permute.xlu1 %445 }
 0x8d3   :  { %1453 = vmatmul.mubr.msk.f32.vlgmr.msra.gmra.mrb[2].mxu0 %vm131_vm4, %v446_v19 }
 0x8d4   :  { %1573 = vmatpush3.bf16.msra.mxu0 %v1749_v8  ;;  %1474 = vmatprep.mubr.msk.f32.mxu0 %vm1710_vm0, %v1711_v13 }
 0x8d5   :  { %1574 = vmatprep.subr.bf16.mxu0 %v1709_v9 }
 0x8d8   :  { %1576 = vmatpush3.bf16.msra.mxu0 %v1761_v12 }
 0x8d9   :  { %1583 = vmatprep.subr.bf16.mxu0 %v1709_v9 }
 0x9a6   :  { %v515_v22 = vpop.f32.mrb[2].mxu0 }
 0x9a7   :  { %v520_v23 = vrot.slane %v515_v22, 2  ;;  %v1454_v24 = vpop.f32.mrb[3].mxu0 }
 0x9a9   :  { %v522_v25 = vadd.f32 %v520_v23, %v1785_v21 }
 0x9ab   :  { %1640 = vtanh.f32 %v522_v25  ;;  %v1329_v27 = vmul.f32 -1.442695, %v522_v25 }
 0x9ad   :  { %1642 = vpow2.f32 %v1329_v27 }
 0x9b5   :  { %v1641_v26 = vpop.eup %1640 }
 0x9b6   :  { %535 = vrot.lane.b32.xlu0 %v1641_v26, %s1712_s24 }
 0x9b7   :  { %v1643_v28 = vpop.eup %1642 }
 0x9b8   :  { %v526_v29 = vadd.f32 1.0, %v1643_v28 }
 0x9ba   :  { %1644 = vrcp.f32 %v526_v29 }
 0x9c4   :  { %v1645_v30 = vpop.eup %1644 }
 0x9c5   :  { %v533_v34 = vmul.f32 %v1645_v30, %v531_v33 }
 0xa28   :  { %v536_v31 = vpop.permute.xlu0 %535 }
 0xa29   :  { %v538_v32 = vmul.f32 %v1645_v30, %v536_v31 }
 0xa2b   :  { %540 = vrot.lane.b32.xlu1 %v538_v32, %s1713_s25 }
 0xa9d   :  { %v541_v35 = vpop.permute.xlu1 %540 }
 0xa9e   :  { %v543_v36 = vadd.f32 %v541_v35, %v533_v34 }
 0xaa0   :  { %1646 = vtanh.f32 %v543_v36  ;;  %v635_v51 = vrot.slane %v543_v36, 6 }
 0xaaa   :  { %v1647_v21 = vpop.eup %1646 }
 0xaab   :  { %546 = vrot.lane.b32.xlu0 %v1647_v21, %s1712_s24 }
 0xb1d   :  { %v547_v37 = vpop.permute.xlu0 %546 }
 0xb1e   :  { %v549_v38 = vmul.f32 %v1645_v30, %v547_v37 }
 0xb20   :  { %v551_v39 = vrot.slane %v549_v38, 6 }
 0xb22   :  { %552 = vrot.lane.b32.xlu1 %v551_v39, %s1713_s25 }
 0xb94   :  { %v553_v40 = vpop.permute.xlu1 %552 }
 0xb95   :  { %1464 = vmatmul.mubr.msk.f32.vlgmr.msra.gmra.mrb[6].mxu1 %vm131_vm4, %v553_v40 }
 0xb96   :  { %1579 = vmatpush3.bf16.msra.mxu1 %v1749_v8  ;;  %1485 = vmatprep.mubr.msk.f32.mxu1 %vm1710_vm0, %v1711_v13 }
 0xb97   :  { %1580 = vmatprep.subr.bf16.mxu1 %v1709_v9 }
 0xb9a   :  { %1582 = vmatpush3.bf16.msra.mxu1 %v1761_v12 }
 0xb9b   :  { %1589 = vmatprep.subr.bf16.mxu1 %v1709_v9 }
 0xc68   :  { %v622_v41 = vpop.f32.mrb[6].mxu1 }
 0xc69   :  { %v626_v42 = vadd.f32 %v1783_v20, %v622_v41  ;;  %v1465_v43 = vpop.f32.mrb[7].mxu1 }
 0xc6b   :  { %1648 = vtanh.f32 %v626_v42  ;;  %v1331_v45 = vmul.f32 -1.442695, %v626_v42 }
 0xc6d   :  { %1650 = vpow2.f32 %v1331_v45 }
 0xc75   :  { %v1649_v44 = vpop.eup %1648 }
 0xc76   :  { %639 = vrot.lane.b32.xlu0 %v1649_v44, %s1712_s24 }
 0xc77   :  { %v1651_v46 = vpop.eup %1650 }
 0xc78   :  { %v630_v47 = vadd.f32 1.0, %v1651_v46 }
 0xc7a   :  { %1652 = vrcp.f32 %v630_v47 }
 0xc84   :  { %v1653_v48 = vpop.eup %1652 }
 0xc85   :  { %v637_v52 = vmul.f32 %v1653_v48, %v635_v51 }
 0xce8   :  { %v640_v49 = vpop.permute.xlu0 %639 }
 0xce9   :  { %v642_v50 = vmul.f32 %v1653_v48, %v640_v49 }
 0xceb   :  { %644 = vrot.lane.b32.xlu1 %v642_v50, %s1713_s25 }
 0xd5d   :  { %v645_v53 = vpop.permute.xlu1 %644 }
 0xd5e   :  { %v647_v54 = vadd.f32 %v645_v53, %v637_v52 }
 0xd60   :  { %1654 = vtanh.f32 %v647_v54 }
 0xd6a   :  { %v1655_v55 = vpop.eup %1654 }
 0xd6b   :  { %650 = vrot.lane.b32.xlu0 %v1655_v55, %s1712_s24  ;;  %v20_v55 = vld [vmem:[%s1942_s1 + $0x40] sm:$0xff] }
 0xddd   :  { %v651_v56 = vpop.permute.xlu0 %650 }
 0xdde   :  { %v653_v57 = vmul.f32 %v1653_v48, %v651_v56 }
 0xde0   :  { %655 = vrot.lane.b32.xlu1 %v653_v57, %s1713_s25  ;;  %v21_v57 = vld [vmem:[%s1942_s1 + $0x48] sm:$0xff] }
 0xe52   :  { %v656_v58 = vpop.permute.xlu1 %655 }
 0xe53   :  { %1475 = vmatmul.mubr.msk.f32.vlgmr.msra.gmra.mrb[4].mxu0 %vm131_vm4, %v656_v58  ;;  %v1593_v58 = vpack.c.bf16 %v21_v57, %v20_v55 }
 0xe54   :  { %1585 = vmatpush3.bf16.msra.mxu0 %v1749_v8  ;;  %1496 = vmatprep.mubr.msk.f32.mxu0 %vm1710_vm0, %v1711_v13 }
 0xe55   :  { %1586 = vmatprep.subr.bf16.mxu0 %v1709_v9 }
 0xe58   :  { %1588 = vmatpush3.bf16.msra.mxu0 %v1761_v12  ;;  %v741_v12 = vrot.slane %v647_v54, 6  ;;  %v19_v54 = vld [vmem:[%s1942_s1 + $0x38] sm:$0xff] }
 0xe59   :  { %1595 = vmatprep.subr.bf16.mxu0 %v1709_v9 }
 0xf26   :  { %v725_v59 = vpop.f32.mrb[4].mxu0 }
 0xf27   :  { %v730_v60 = vrot.slane %v725_v59, 6  ;;  %v1476_v61 = vpop.f32.mrb[5].mxu0 }
 0xf29   :  { %v732_v62 = vadd.f32 %v1783_v20, %v730_v60 }
 0xf2b   :  { %1656 = vtanh.f32 %v732_v62  ;;  %v1333_v0 = vmul.f32 -1.442695, %v732_v62 }
 0xf2d   :  { %1658 = vpow2.f32 %v1333_v0  ;;  %v23_v0 = vld [vmem:[%s1942_s1 + $0x58] sm:$0xff] }
 0xf35   :  { %v1657_v63 = vpop.eup %1656 }
 0xf36   :  { %745 = vrot.lane.b32.xlu0 %v1657_v63, %s1712_s24 }
 0xf37   :  { %v1659_v8 = vpop.eup %1658 }
 0xf38   :  { %v736_v1 = vadd.f32 1.0, %v1659_v8  ;;  %v24_v8 = vld [vmem:[%s1942_s1 + $0x60] sm:$0xff] }
 0xf3a   :  { %1660 = vrcp.f32 %v736_v1  ;;  %v25_v1 = vld [vmem:[%s1942_s1 + $0x68] sm:$0xff] }
 0xf44   :  { %v1661_v2 = vpop.eup %1660 }
 0xf45   :  { %v743_v5 = vmul.f32 %v1661_v2, %v741_v12  ;;  %v22_v12 = vld [vmem:[%s1942_s1 + $0x50] sm:$0xff] }
 0xfa8   :  { %v746_v3 = vpop.permute.xlu0 %745 }
 0xfa9   :  { %v748_v4 = vmul.f32 %v1661_v2, %v746_v3  ;;  %v26_v3 = vld [vmem:[%s1942_s1 + $0x70] sm:$0xff] }
 0xfab   :  { %750 = vrot.lane.b32.xlu1 %v748_v4, %s1713_s25  ;;  %v1599_v4 = vpack.c.bf16 %v26_v3, %v25_v1 }
0x101d   :  { %v751_v6 = vpop.permute.xlu1 %750 }
0x101e   :  { %v753_v7 = vadd.f32 %v751_v6, %v743_v5  ;;  %v1055_v6 = vshrl.u32 %v35_v14, 7  ;;  %v27_v14 = vld [vmem:[%s1942_s1 + $0x78] sm:$0xff] }
0x1020   :  { %1662 = vtanh.f32 %v753_v7  ;;  %v848_v31 = vrot.slane %v753_v7, 6 }
0x102a   :  { %v1663_v10 = vpop.eup %1662 }
0x102b   :  { %756 = vrot.lane.b32.xlu0 %v1663_v10, %s1712_s24 }
0x109d   :  { %v757_v11 = vpop.permute.xlu0 %756 }
0x109e   :  { %v759_v15 = vmul.f32 %v1661_v2, %v757_v11  ;;  %v1596_v2 = vpack.c.bf16 %v24_v8, %v23_v0 }
0x10a0   :  { %v761_v16 = vrot.slane %v759_v15, 2  ;;  %v1056_v15 = vsub.s32 0, %v1055_v6 }
0x10a2   :  { %762 = vrot.lane.b32.xlu1 %v761_v16, %s1713_s25 }
0x1114   :  { %v763_v17 = vpop.permute.xlu1 %762 }
0x1115   :  { %1486 = vmatmul.mubr.msk.f32.vlgmr.msra.gmra.mrb[8].mxu1 %vm131_vm4, %v763_v17 }
0x1116   :  { %1507 = vmatprep.mubr.msk.f32.mxu1 %vm1710_vm0, %v1711_v13 }
0x11e8   :  { %v832_v18 = vpop.f32.mrb[8].mxu1 }
0x11e9   :  { %v837_v19 = vrot.slane %v832_v18, 4  ;;  %v1487_v22 = vpop.f32.mrb[9].mxu1 }
0x11eb   :  { %v839_v23 = vadd.f32 %v1783_v20, %v837_v19 }
0x11ed   :  { %1664 = vtanh.f32 %v839_v23  ;;  %v1335_v25 = vmul.f32 -1.442695, %v839_v23 }
0x11ef   :  { %1666 = vpow2.f32 %v1335_v25 }
0x11f7   :  { %v1665_v24 = vpop.eup %1664 }
0x11f8   :  { %852 = vrot.lane.b32.xlu0 %v1665_v24, %s1712_s24 }
0x11f9   :  { %v1667_v26 = vpop.eup %1666 }
0x11fa   :  { %v843_v27 = vadd.f32 1.0, %v1667_v26 }
0x11fc   :  { %1668 = vrcp.f32 %v843_v27 }
0x1206   :  { %v1669_v28 = vpop.eup %1668 }
0x1207   :  { %v850_v32 = vmul.f32 %v1669_v28, %v848_v31  ;;  %v31_v31 = vld [vmem:[%s1942_s1 + $0x98] sm:$0xff] }
0x126a   :  { %v853_v29 = vpop.permute.xlu0 %852 }
0x126b   :  { %v855_v30 = vmul.f32 %v1669_v28, %v853_v29  ;;  %v30_v29 = vld [vmem:[%s1942_s1 + $0x90] sm:$0xff] }
0x126d   :  { %857 = vrot.lane.b32.xlu1 %v855_v30, %s1713_s25 }
0x12df   :  { %v858_v33 = vpop.permute.xlu1 %857 }
0x12e0   :  { %v860_v34 = vadd.f32 %v858_v33, %v850_v32  ;;  %v1605_v32 = vpack.c.bf16 %v31_v31, %v30_v29 }
0x12e2   :  { %1670 = vtanh.f32 %v860_v34  ;;  %v955_v50 = vrot.slane %v860_v34, 6 }
0x12ec   :  { %v1671_v35 = vpop.eup %1670 }
0x12ed   :  { %863 = vrot.lane.b32.xlu0 %v1671_v35, %s1712_s24 }
0x135f   :  { %v864_v36 = vpop.permute.xlu0 %863 }
0x1360   :  { %v866_v21 = vmul.f32 %v1669_v28, %v864_v36  ;;  %v28_v28 = vld [vmem:[%s1942_s1 + $0x80] sm:$0xff] }
0x1362   :  { %v868_v37 = vrot.slane %v866_v21, 4  ;;  %v1222_v21 = vsub.s32 1, %v1055_v6 }
0x1364   :  { %869 = vrot.lane.b32.xlu1 %v868_v37, %s1713_s25 }
0x13d6   :  { %v870_v38 = vpop.permute.xlu1 %869 }
0x13d7   :  { %1497 = vmatmul.mubr.msk.f32.vlgmr.msra.gmra.mrb[6].mxu0 %vm131_vm4, %v870_v38 }
0x13d8   :  { %1518 = vmatprep.mubr.msk.f32.mxu0 %vm1710_vm0, %v1711_v13  ;;  %1597 = vmatpush3.bf16.msra.mxu0 %v1596_v2 }
0x13d9   :  { %1598 = vmatprep.subr.bf16.mxu0 %v1709_v9 }
0x13dc   :  { %1600 = vmatpush3.bf16.msra.mxu0 %v1599_v4 }
0x13dd   :  { %1601 = vmatprep.subr.bf16.mxu0 %v1709_v9 }
0x14aa   :  { %v939_v39 = vpop.f32.mrb[6].mxu0 }
0x14ab   :  { %v944_v40 = vrot.slane %v939_v39, 2  ;;  %v1498_v41 = vpop.f32.mrb[7].mxu0 }
0x14ad   :  { %v946_v42 = vadd.f32 %v1783_v20, %v944_v40  ;;  %v18_v20 = vld [vmem:[%s1942_s1 + $0x30] sm:$0xff] }
0x14ae   :  { %v1590_v56 = vpack.c.bf16 %v19_v54, %v18_v20 }
0x14af   :  { %1672 = vtanh.f32 %v946_v42  ;;  %v1337_v44 = vmul.f32 -1.442695, %v946_v42 }
0x14b0   :  { %1591 = vmatpush3.bf16.msra.mxu1 %v1590_v56 }
0x14b1   :  { %1674 = vpow2.f32 %v1337_v44  ;;  %1592 = vmatprep.subr.bf16.mxu1 %v1709_v9 }
0x14b4   :  { %1594 = vmatpush3.bf16.msra.mxu1 %v1593_v58 }
0x14b5   :  { %1521 = vmatprep.subr.mxu1 %v1711_v13 }
0x14b9   :  { %v1673_v43 = vpop.eup %1672 }
0x14ba   :  { %959 = vrot.lane.b32.xlu0 %v1673_v43, %s1712_s24 }
0x14bb   :  { %v1675_v45 = vpop.eup %1674 }
0x14bc   :  { %v950_v46 = vadd.f32 1.0, %v1675_v45 }
0x14be   :  { %1676 = vrcp.f32 %v950_v46 }
0x14c8   :  { %v1677_v47 = vpop.eup %1676 }
0x14c9   :  { %v957_v51 = vmul.f32 %v1677_v47, %v955_v50 }
0x152c   :  { %v960_v48 = vpop.permute.xlu0 %959 }
0x152d   :  { %v962_v49 = vmul.f32 %v1677_v47, %v960_v48 }
0x152f   :  { %964 = vrot.lane.b32.xlu1 %v962_v49, %s1713_s25 }
0x15a1   :  { %v965_v52 = vpop.permute.xlu1 %964 }
0x15a2   :  { %v967_v53 = vadd.f32 %v965_v52, %v957_v51 }
0x15a4   :  { %1678 = vtanh.f32 %v967_v53 }
0x15ae   :  { %v1679_v59 = vpop.eup %1678 }
0x15af   :  { %970 = vrot.lane.b32.xlu0 %v1679_v59, %s1712_s24 }
0x1621   :  { %v971_v60 = vpop.permute.xlu0 %970 }
0x1622   :  { %v973_v61 = vmul.f32 %v1677_v47, %v971_v60 }
0x1624   :  { %v975_v62 = vrot.slane %v973_v61, 6 }
0x1626   :  { %976 = vrot.lane.b32.xlu1 %v975_v62, %s1713_s25 }
0x1698   :  { %v977_v63 = vpop.permute.xlu1 %976 }
0x1699   :  { %1508 = vmatmul.mubr.msk.f32.vlgmr.msra.gmra.mrb[10].mxu1 %vm131_vm4, %v977_v63 }
0x169a   :  { %1523 = vmatprep.mubr.msk.f32.mxu1 %vm1710_vm0, %v1711_v13  ;;  %1522 = vmatpush3.msra.mxu1 %v27_v14 }
0x176c   :  { %v1046_v5 = vpop.f32.mrb[10].mxu1 }
0x176d   :  { %v1047_v7 = vadd.f32 %v1046_v5, %v22_v12  ;;  %v1509_v10 = vpop.f32.mrb[11].mxu1 }
0x176f   :  { %v1051_v11 = vrot.slane %v1047_v7, 1  ;;  %v1223_v37 = vrot.slane %v1047_v7, %v1222_v21 }
0x1771   :  { %v1053_v16 = vsub.f32 %v1047_v7, %v1051_v11 }
0x1773   :  { %v1057_v17 = vrot.slane %v1053_v16, %v1056_v15 }
0x1775   :  { %1216 = vrot.lane.b32.xlu1 %v1057_v17, %s1712_s24  ;;  %1059 = vrot.lane.b32.xlu0 %v1057_v17, %s1714_s16 }
0x17e7   :  { %v1060_v18 = vpop.permute.xlu0 %1059  ;;  %v1217_v33 = vpop.permute.xlu1 %1216 }
0x17e8   :  { %v1062_v19 = vmul.f32 %v1060_v18, %v1047_v7 }
0x17ea   :  { %1519 = vmatmul.mubr.msk.f32.vlgmr.msra.gmra.mrb[8].mxu0 %vm131_vm4, %v1062_v19 }
0x17eb   :  { %1534 = vmatprep.mubr.msk.f32.mxu0 %vm1710_vm0, %v1711_v13  ;;  %v29_v13 = vld [vmem:[%s1942_s1 + $0x88] sm:$0xff] }
0x17ec   :  { %v1602_v30 = vpack.c.bf16 %v29_v13, %v28_v28 }
0x17ee   :  { %1603 = vmatpush3.bf16.msra.mxu0 %v1602_v30 }
0x17ef   :  { %1604 = vmatprep.subr.bf16.mxu0 %v1709_v9  ;;  %v32_v9 = vld [vmem:[%s1942_s1 + $0xa0] sm:$0xff] }
0x17f2   :  { %1606 = vmatpush3.bf16.msra.mxu0 %v1605_v32 }
0x18bd   :  { %v1132_v22 = vpop.f32.mrb[8].mxu0 }
0x18be   :  { %v1340_v23 = vmul.f32 -1.442695, %v1132_v22  ;;  %v1520_v24 = vpop.f32.mrb[9].mxu0 }
0x18c0   :  { %1680 = vpow2.f32 %v1340_v23 }
0x18ca   :  { %v1681_v25 = vpop.eup %1680 }
0x18cb   :  { %v1139_v26 = vadd.f32 1.0, %v1681_v25 }
0x18cd   :  { %1682 = vrcp.f32 %v1139_v26 }
0x18d7   :  { %v1683_v27 = vpop.eup %1682 }
0x18d8   :  { %1524 = vmatmul.mubr.msk.f32.vlgmr.msra.gmra.mrb[12].mxu1 %vm1142_vm5, %v1683_v27 }
0x19ab   :  { %v1212_v34 = vpop.f32.mrb[12].mxu1 }
0x19ac   :  { %v1219_v35 = vmul.f32 %v1217_v33, %v1212_v34  ;;  %v1525_v36 = vpop.f32.mrb[13].mxu1 }
0x19ae   :  { %1225 = vrot.lane.b32.xlu0 %v1219_v35, %s1712_s24 }
0x1a20   :  { %v1226_v38 = vpop.permute.xlu0 %1225 }
0x1a21   :  { %v1228_v39 = vadd.f32 %v1226_v38, %v1223_v37 }
0x1a23   :  { %1230 = vrot.lane.b32.xlu1 %v1228_v39, %s1712_s24 }
0x1a95   :  { %v1231_v40 = vpop.permute.xlu1 %1230 }
0x1a96   :  { %1535 = vmatmul.mubr.msk.f32.vlgmr.msra.gmra.mrb[10].mxu0 %vm131_vm4, %v1231_v40 }
0x1b69   :  { %v1300_v41 = vpop.f32.mrb[10].mxu0 }
0x1b6a   :  { %v1301_v42 = vadd.f32 %v1300_v41, %v32_v9  ;;  %v1536_v43 = vpop.f32.mrb[11].mxu0 }
0x1b6c   :  { %1304 = vst [vmem:[#allocation2] sm:$0x3] %v1301_v42 }
0x1b6d   :  { %1695 = shalt.err (!%p1692_p4)
}
0x1b6e   :  { %s1696_s5 = scalar_lea.hbm %s1943_s2, 32 }
0x1b6f   :  { %p1697_p5 = scmp.ne.s32.totalorder %s1943_s2, %s1696_s5  ;;  %p1700_p6 = scmp.lt.u32.totalorder %s1696_s5, %s1943_s2 }
0x1b71   :  { %p1702_p7 = pnand %p1700_p6, %p1697_p5 }
0x1b73   :  { %1705 = shalt.err (!%p1702_p7)
}
0x1b74   :  { %1314 = dma.vmem_to_hbm [thread:$0]  %s1312_s30, 32, %s1943_s2, [#allocation3]  }
0x1b75   :  { %1706 = dma.done.wait [#allocation3], 32  }
0x1b76   :  { %1707 = vsyncadd [#allocation3], 4294967264 }
0x1b77   :  { %1318 = vsyncpa [#allocation3], 1 }

</bundles_post_ra>
